<compile_context>
chip_gen: v7x
topology: tpu7x:2x2x1
jax: 0.10.0
libtpu: 0.0.40
codegen_flags: <defaults>
</compile_context>

<pallas_src>
import numpy as np
import jax
import jax.numpy as jnp
from jax.experimental import pallas as pl
from jax.experimental.pallas import tpu as pltpu

K1, P1 = 3, 2              # ConvTranspose2d(3 -> 5, kernel=3, padding=2), stride=1
K2, PH2, PW2 = 2, 8, 16    # ConvTranspose2d(5 -> 1, kernel=2, padding=(8, 16)), stride=1
LANES = 128


def model_kernel(p_ref, w1_ref, b1_ref, w2_ref, b2_ref, out_ref):
    # p_ref  : (T1, HW1)  im2col'd conv1 windows of THIS sample (lane-dense)
    # w1_ref : (C1, T1)   conv1 weight matrix, t = (ci*K1 + kh)*K1 + kw
    # b1_ref : (C1, 1)    conv1 bias
    # w2_ref : (C1, HW1)  conv2 weights scattered onto the v9 pixels they read
    # b2_ref : (1, 1)     conv2 bias
    # out_ref: (C1, HW1)  packed v15 of THIS sample

    # ---- conv_transpose1: one MXU matmul covers all taps & output channels ----
    v1 = jnp.dot(w1_ref[...], p_ref[...], preferred_element_type=jnp.float32)
    v1 = v1 + b1_ref[...]                       # (C1,1) bias broadcast along lanes

    # ---- tanh-GELU chain (VALU + EUP) ----
    v2 = v1 * 0.5
    v5 = v1 + (v1 * v1 * v1) * 0.044715
    v7 = jnp.tanh(v5 * 0.7978845608028654)
    v9 = v2 * (v7 + 1.0)

    # ---- conv_transpose2 -> single output pixel for this sample (C2=H2=W2=1) ----
    v10 = jnp.sum(v9 * w2_ref[...], keepdims=True) + b2_ref[...]   # (1, 1)

    # ---- v11..v15 epilogue ----
    v11 = v10 * 0.1
    v13 = v10 + v11
    v14 = v11 + v9 * 0.01
    out_ref[...] = v13 * v14                    # full-lane, unmasked store


def prepare_params(w1, b1, w2, b2, H1, W1):
    """Weight-only preprocessing.  Done ONCE, outside the per-call jitted path."""
    w1 = np.asarray(w1, np.float32)
    b1 = np.asarray(b1, np.float32)
    w2 = np.asarray(w2, np.float32)
    b2 = np.asarray(b2, np.float32)
    CIN, C1 = w1.shape[0], w1.shape[1]
    T1 = CIN * K1 * K1

    # conv1 weights as (C1, T1) with tap order t = (ci*K1 + kh)*K1 + kw
    w1mat = np.transpose(w1, (1, 0, 2, 3)).reshape(C1, T1)
    b1col = b1.reshape(C1, 1)

    # conv2 weights scattered onto the (within-sample) v9 pixel each tap reads
    w2mask = np.zeros((C1, H1 * W1), np.float32)
    for ci in range(C1):
        for kh in range(K2):
            for kw in range(K2):
                w2mask[ci, (PH2 - kh) * W1 + (PW2 - kw)] += w2[ci, 0, kh, kw]
    b2col = b2.reshape(1, 1)

    return (jnp.asarray(w1mat), jnp.asarray(b1col),
            jnp.asarray(w2mask), jnp.asarray(b2col))


@jax.jit
def model_forward(x, w1mat, b1col, w2mask, b2col):
    x = x.astype(jnp.float32)
    N, CIN, H, W = x.shape
    C1 = w1mat.shape[0]
    T1 = CIN * K1 * K1
    H1, W1 = H + K1 - 1 - 2 * P1, W + K1 - 1 - 2 * P1
    H2, W2 = H1 + K2 - 1 - 2 * PH2, W1 + K2 - 1 - 2 * PW2
    HW1 = H1 * W1

    assert H1 > 0 and W1 > 0 and H2 > 0 and W2 > 0, "conv output sizes must be positive"
    # No-zero-pad tap extraction validity (both convs).
    assert P1 >= K1 - 1 and PH2 >= K2 - 1 and PW2 >= K2 - 1
    assert PH2 <= H1 - 1 and PW2 <= W1 - 1
    # The (v10-derived)*(v9-derived) broadcast is only defined when conv2's output
    # is (N, 1, 1, 1), exactly like in the PyTorch module.
    assert H2 == 1 and W2 == 1
    # Lane-dense packing requirement: each sample fills whole 128-lane rows.
    assert HW1 % LANES == 0, "H1*W1 must be a multiple of 128 for the packed layout"
    assert w1mat.shape == (C1, T1) and w2mask.shape == (C1, HW1)

    # ---- im2col of x (per-call layout plumbing; everything weight-derived is prebuilt) ----
    wins = []
    for ci in range(CIN):
        for kh in range(K1):
            for kw in range(K1):
                r0, c0 = P1 - kh, P1 - kw
                wins.append(x[:, ci, r0:r0 + H1, c0:c0 + W1].reshape(N, HW1))
    patches = jnp.stack(wins, axis=0).reshape(T1, N * HW1)      # flat idx = n*HW1 + h*W1 + w

    cost = pl.CostEstimate(
        flops=2 * T1 * C1 * N * HW1 + 14 * C1 * N * HW1,
        transcendentals=C1 * N * HW1,
        bytes_accessed=4 * (T1 * N * HW1 + 2 * C1 * N * HW1 + C1 * HW1 + C1 * T1),
    )

    out_packed = pl.pallas_call(
        model_kernel,
        out_shape=jax.ShapeDtypeStruct((C1, N * HW1), jnp.float32),
        grid_spec=pltpu.PrefetchScalarGridSpec(
            num_scalar_prefetch=0,
            grid=(N,),
            in_specs=[
                pl.BlockSpec((T1, HW1), lambda n: (0, n)),     # patches: this sample's lanes
                pl.BlockSpec((C1, T1), lambda n: (0, 0)),      # w1 matrix (resident)
                pl.BlockSpec((C1, 1), lambda n: (0, 0)),       # b1
                pl.BlockSpec((C1, HW1), lambda n: (0, 0)),     # w2 scatter mask (resident)
                pl.BlockSpec((1, 1), lambda n: (0, 0)),        # b2
            ],
            out_specs=pl.BlockSpec((C1, HW1), lambda n: (0, n)),
        ),
        compiler_params=pltpu.CompilerParams(dimension_semantics=("parallel",)),
        cost_estimate=cost,
    )(patches, w1mat, b1col, w2mask, b2col)

    # unpack (C1, N*HW1) -> (N, C1, H1, W1)
    return jnp.transpose(out_packed.reshape(C1, N, H1, W1), (1, 0, 2, 3))


# ----------------------------- numpy reference -------------------------------
def _ref_conv_transpose(x, w, b, ph, pw):
    # PyTorch ConvTranspose2d, stride=1:
    # y[n,co,oh,ow] = b[co] + sum_{ci,kh,kw} x[n,ci,oh+ph-kh,ow+pw-kw] * w[ci,co,kh,kw]
    N, CIN, H, W = x.shape
    _, CO, KH, KW = w.shape
    HO = H + KH - 1 - 2 * ph
    WO = W + KW - 1 - 2 * pw
    y = np.zeros((N, CO, HO, WO), np.float32)
    for oh in range(HO):
        for ow in range(WO):
            s = np.zeros((N, CO), np.float32)
            for kh in range(KH):
                for kw in range(KW):
                    ih, iw = oh + ph - kh, ow + pw - kw
                    if 0 <= ih < H and 0 <= iw < W:
                        s += x[:, :, ih, iw] @ w[:, :, kh, kw]
            y[:, :, oh, ow] = s + b[None, :]
    return y


def _ref_forward(x, w1, b1, w2, b2):
    v1 = _ref_conv_transpose(x, w1, b1, P1, P1)
    v2 = v1 * 0.5
    v5 = v1 + (v1 ** 3) * 0.044715
    v7 = np.tanh(v5 * 0.7978845608028654)
    v9 = v2 * (v7 + 1.0)
    v10 = _ref_conv_transpose(v9, w2, b2, PH2, PW2)
    v11 = v10 * 0.1
    v12 = v9 * 0.01
    v13 = v10 + v11
    v14 = v11 + v12
    return v13 * v14


if __name__ == "__main__":
    key = jax.random.PRNGKey(0)
    kx, kw1, kb1, kw2, kb2 = jax.random.split(key, 5)

    # Shape family for which the module's forward is well defined (conv2 out = (N,1,1,1)).
    x = jax.random.normal(kx, (2, 3, 18, 34), jnp.float32)
    w1 = jax.random.normal(kw1, (3, 5, 3, 3), jnp.float32) * 0.2   # ConvTranspose2d(3,5,3) weight
    b1 = jax.random.normal(kb1, (5,), jnp.float32) * 0.1
    w2 = jax.random.normal(kw2, (5, 1, 2, 2), jnp.float32) * 0.2   # ConvTranspose2d(5,1,2) weight
    b2 = jax.random.normal(kb2, (1,), jnp.float32) * 0.1

    H1, W1 = 18 + K1 - 1 - 2 * P1, 34 + K1 - 1 - 2 * P1
    params = prepare_params(w1, b1, w2, b2, H1, W1)   # once, outside the jitted path

    out = jax.block_until_ready(model_forward(x, *params))

    ref = _ref_forward(np.asarray(x), np.asarray(w1), np.asarray(b1),
                       np.asarray(w2), np.asarray(b2))
    assert out.shape == ref.shape, (out.shape, ref.shape)
    np.testing.assert_allclose(np.asarray(out), ref, rtol=2e-3, atol=2e-3)
    print("KERNEL_OK")
</pallas_src>

<mosaic_0001>
module attributes {stable_mosaic.version = 11 : i64} {
  func.func @model_kernel(%arg0: i32, %arg1: memref<27x512xf32, #tpu.memory_space<vmem>>, %arg2: memref<5x27xf32, #tpu.memory_space<vmem>>, %arg3: memref<5x1xf32, #tpu.memory_space<vmem>>, %arg4: memref<5x512xf32, #tpu.memory_space<vmem>>, %arg5: memref<1x1xf32, #tpu.memory_space<vmem>>, %arg6: memref<5x512xf32, #tpu.memory_space<vmem>>) attributes {dimension_semantics = [#tpu.dimension_semantics<parallel>], iteration_bounds = array<i64: 2>, scalar_prefetch = 0 : i64, scratch_operands = 0 : i64, tpu.core_type = #tpu.core_type<tc>, window_params = [{transform_indices = @transform_0, window_bounds = array<i64: 27, 512>}, {pipeline_mode = #tpu.pipeline_mode<synchronous>, transform_indices = @transform_1, window_bounds = array<i64: 5, 27>}, {pipeline_mode = #tpu.pipeline_mode<synchronous>, transform_indices = @transform_2, window_bounds = array<i64: 5, 1>}, {pipeline_mode = #tpu.pipeline_mode<synchronous>, transform_indices = @transform_3, window_bounds = array<i64: 5, 512>}, {pipeline_mode = #tpu.pipeline_mode<synchronous>, transform_indices = @transform_4, window_bounds = array<i64: 1, 1>}, {transform_indices = @transform_5, window_bounds = array<i64: 5, 512>}]} {
    %c0 = arith.constant 0 : index
    %c0_0 = arith.constant 0 : index
    %0 = vector.load %arg2[%c0, %c0_0] : memref<5x27xf32, #tpu.memory_space<vmem>>, vector<5x27xf32>
    %c0_1 = arith.constant 0 : index
    %c0_2 = arith.constant 0 : index
    %1 = vector.load %arg1[%c0_1, %c0_2] : memref<27x512xf32, #tpu.memory_space<vmem>>, vector<27x512xf32>
    %cst = arith.constant dense<0.000000e+00> : vector<5x512xf32>
    %2 = tpu.matmul %0, %1, %cst {dimension_numbers = #tpu.dot_dimension_numbers<[1], [0], [0], [1], [0, 0, 1, 1], [], []>} : vector<5x27xf32>, vector<27x512xf32>, vector<5x512xf32> -> vector<5x512xf32>
    %c0_3 = arith.constant 0 : index
    %c0_4 = arith.constant 0 : index
    %3 = vector.load %arg3[%c0_3, %c0_4] : memref<5x1xf32, #tpu.memory_space<vmem>>, vector<5x1xf32>
    %4 = vector.broadcast %3 : vector<5x1xf32> to vector<5x512xf32>
    %5 = arith.addf %2, %4 : vector<5x512xf32>
    %cst_5 = arith.constant 5.000000e-01 : f32
    %6 = vector.broadcast %cst_5 : f32 to vector<5x512xf32>
    %7 = arith.mulf %5, %6 : vector<5x512xf32>
    %8 = arith.mulf %5, %5 : vector<5x512xf32>
    %9 = arith.mulf %8, %5 : vector<5x512xf32>
    %cst_6 = arith.constant 4.471500e-02 : f32
    %10 = vector.broadcast %cst_6 : f32 to vector<5x512xf32>
    %11 = arith.mulf %9, %10 : vector<5x512xf32>
    %12 = arith.addf %5, %11 : vector<5x512xf32>
    %cst_7 = arith.constant 0.797884583 : f32
    %13 = vector.broadcast %cst_7 : f32 to vector<5x512xf32>
    %14 = arith.mulf %12, %13 : vector<5x512xf32>
    %15 = math.tanh %14 : vector<5x512xf32>
    %cst_8 = arith.constant 1.000000e+00 : f32
    %16 = vector.broadcast %cst_8 : f32 to vector<5x512xf32>
    %17 = arith.addf %15, %16 : vector<5x512xf32>
    %18 = arith.mulf %7, %17 : vector<5x512xf32>
    %c0_9 = arith.constant 0 : index
    %c0_10 = arith.constant 0 : index
    %19 = vector.load %arg4[%c0_9, %c0_10] : memref<5x512xf32, #tpu.memory_space<vmem>>, vector<5x512xf32>
    %20 = arith.mulf %18, %19 : vector<5x512xf32>
    %21 = vector.shape_cast %20 : vector<5x512xf32> to vector<1x5x512xf32>
    %cst_11 = arith.constant dense<0.000000e+00> : vector<1xf32>
    %22 = vector.multi_reduction <add>, %21, %cst_11 [1, 2] : vector<1x5x512xf32> to vector<1xf32>
    %23 = vector.shape_cast %22 : vector<1xf32> to vector<1x1x1xf32>
    %24 = vector.extract %23[0, 0, 0] : f32 from vector<1x1x1xf32>
    %25 = vector.broadcast %24 : f32 to vector<1x1xf32>
    %c0_12 = arith.constant 0 : index
    %c0_13 = arith.constant 0 : index
    %26 = vector.load %arg5[%c0_12, %c0_13] : memref<1x1xf32, #tpu.memory_space<vmem>>, vector<1x1xf32>
    %27 = arith.addf %25, %26 : vector<1x1xf32>
    %cst_14 = arith.constant 1.000000e-01 : f32
    %28 = vector.broadcast %cst_14 : f32 to vector<1x1xf32>
    %29 = arith.mulf %27, %28 : vector<1x1xf32>
    %30 = arith.addf %27, %29 : vector<1x1xf32>
    %cst_15 = arith.constant 0.00999999977 : f32
    %31 = vector.broadcast %cst_15 : f32 to vector<5x512xf32>
    %32 = arith.mulf %18, %31 : vector<5x512xf32>
    %33 = vector.broadcast %29 : vector<1x1xf32> to vector<5x512xf32>
    %34 = arith.addf %33, %32 : vector<5x512xf32>
    %35 = vector.broadcast %30 : vector<1x1xf32> to vector<5x512xf32>
    %36 = arith.mulf %35, %34 : vector<5x512xf32>
    %c0_16 = arith.constant 0 : index
    %c0_17 = arith.constant 0 : index
    %37 = vector.load %arg6[%c0_16, %c0_17] : memref<5x512xf32, #tpu.memory_space<vmem>>, vector<5x512xf32>
    tpu.vector_store %arg6[%c0_16, %c0_17], %36 {strides = array<i32>} : memref<5x512xf32, #tpu.memory_space<vmem>>, vector<5x512xf32>,
    return
  }
  func.func @transform_0(%arg0: i32) -> (i32, i32) {
    %c0_i32 = arith.constant 0 : i32
    %c0_i32_0 = arith.constant 0 : i32
    return %c0_i32, %arg0 : i32, i32
  }
  func.func @transform_1(%arg0: i32) -> (i32, i32) {
    %c0_i32 = arith.constant 0 : i32
    %c0_i32_0 = arith.constant 0 : i32
    %c0_i32_1 = arith.constant 0 : i32
    return %c0_i32, %c0_i32_0 : i32, i32
  }
  func.func @transform_2(%arg0: i32) -> (i32, i32) {
    %c0_i32 = arith.constant 0 : i32
    %c0_i32_0 = arith.constant 0 : i32
    %c0_i32_1 = arith.constant 0 : i32
    return %c0_i32, %c0_i32_0 : i32, i32
  }
  func.func @transform_3(%arg0: i32) -> (i32, i32) {
    %c0_i32 = arith.constant 0 : i32
    %c0_i32_0 = arith.constant 0 : i32
    %c0_i32_1 = arith.constant 0 : i32
    return %c0_i32, %c0_i32_0 : i32, i32
  }
  func.func @transform_4(%arg0: i32) -> (i32, i32) {
    %c0_i32 = arith.constant 0 : i32
    %c0_i32_0 = arith.constant 0 : i32
    %c0_i32_1 = arith.constant 0 : i32
    return %c0_i32, %c0_i32_0 : i32, i32
  }
  func.func @transform_5(%arg0: i32) -> (i32, i32) {
    %c0_i32 = arith.constant 0 : i32
    %c0_i32_0 = arith.constant 0 : i32
    return %c0_i32, %arg0 : i32, i32
  }
}

</mosaic_0001>

<bundles_post_ra>
// kernel: model_forward.1
= control target key start
LH: loop header
LB: loop body
LE: loop exit
PB: predicated region body
PF: predicated region fallthrough
CT: control target
= control target key end

     0   :  { %s862_s0 = inlined_call_operand.vmem [shape: f32[27,1024], index: 0, kind: input, shape index: {}]   ;;  %s863_s1 = inlined_call_operand.vmem [shape: f32[5,27], index: 1, kind: input, shape index: {}]   ;;  %s864_s2 = inlined_call_operand.vmem [shape: f32[5,1], index: 2, kind: input, shape index: {}]   ;;  %s865_s3 = inlined_call_operand.vmem [shape: f32[5,512], index: 3, kind: input, shape index: {}]   ;;  %s866_s4 = inlined_call_operand.<no memory space> [shape: f32[1,1], index: 4, kind: input, shape index: {}]   ;;  %s867_s5 = inlined_call_operand.vmem [shape: f32[5,1024], index: 5, kind: output, shape index: {}]  }
   0x1   :  { %v10_v0 = vstv %s866_s4 }
   0x2   :  { %11 = vst [vmem:[#allocation2] sm:$0x1] %v10_v0 }
   0x3   :  { %s762_s20 = smov 0   ;;  %s764_s21 = smov 0  }
   0x4   :  { %s766_s22 = smov 0  }
   0x5 LB: > { %s623_s4 = sadd.s32 4294967295, %s724_s22   ;;  %s779_s23 = sadd.s32 1, %s724_s22   ;;  %s724_s22 = sphi %s766_s22, %s872_s22   ;;  %s720_s21 = sphi %s764_s21, %s871_s21   ;;  %s716_s20 = sphi %s762_s20, %s870_s20  }
   0x6   : > { %s21_s24 = ssub.s32 %s724_s22, %s779_s23  ;;  %s24_s25 = sadd.s32 1, %s720_s21 }
   0x7   : > { %p22_p0 = scmp.eq.s32.totalorder %s21_s24, 0  ;;  %p31_p1 = scmp.ne.s32.totalorder %s720_s21, %s716_s20 }
   0x8   : > { %p32_p2 = scmp.eq.s32.totalorder %s724_s22, 0  ;;  %p626_p4 = scmp.ge.s32.totalorder %s724_s22, 2 }
   0x9   : > { %s788_s26 = scalar_select %p22_p0, %s720_s21, %s24_s25  }
   0xa   : > { %p33_p3 = por %p32_p2, %p31_p1  ;;  %179 = sbr.rel (%p626_p4) target bundleno = 29 (0x1d), region = 32 }
  0x11   : > { %182 = sbr.rel (!%p33_p3) target bundleno = 29 (0x1d), region = 36  ;;  %s184_s27 = sand.u32 (%p33_p3), 1, %s720_s21  }
  0x12   : > { %s642_s28 = sshll.u32 (%p33_p3), %s724_s22, 5  ;;  %s627_s29 = sshll.u32 (%p33_p3), %s184_s27, 7 }
  0x13   : > { %s796_s7 = scalar_lea.vmem (%p33_p3), %s862_s0, %s642_s28  ;;  %s186_s8 = scalar_lea.vmem (%p33_p3), [#allocation3], %s627_s29 }
  0x14   : > { %v202_v1 = vld [vmem:[%s796_s7] sm:$0xff] (%p33_p3)  ;;  %v204_v2 = vld [vmem:[%s796_s7 + $0x8] sm:$0xff] (%p33_p3)  ;;  %v206_v3 = vld [vmem:[%s796_s7 + $0x10] sm:$0xff] (%p33_p3) }
  0x15   : > { %203 = vst [vmem:[%s186_s8] sm:$0xff] (%p33_p3), %v202_v1  ;;  %205 = vst [vmem:[%s186_s8 + $0x8] sm:$0xff] (%p33_p3), %v204_v2  ;;  %v208_v4 = vld [vmem:[%s796_s7 + $0x18] sm:$0xff] (%p33_p3)  ;;  %v210_v5 = vld [vmem:[%s796_s7 + $0x40] sm:$0xff] (%p33_p3) }
  0x16   : > { %207 = vst [vmem:[%s186_s8 + $0x10] sm:$0xff] (%p33_p3), %v206_v3  ;;  %v212_v6 = vld [vmem:[%s796_s7 + $0x48] sm:$0xff] (%p33_p3)  ;;  %209 = vst [vmem:[%s186_s8 + $0x18] sm:$0xff] (%p33_p3), %v208_v4  ;;  %v214_v7 = vld [vmem:[%s796_s7 + $0x50] sm:$0xff] (%p33_p3) }
  0x17   : > { %211 = vst [vmem:[%s186_s8 + $0x20] sm:$0xff] (%p33_p3), %v210_v5  ;;  %213 = vst [vmem:[%s186_s8 + $0x28] sm:$0xff] (%p33_p3), %v212_v6  ;;  %v216_v8 = vld [vmem:[%s796_s7 + $0x58] sm:$0xff] (%p33_p3)  ;;  %v218_v9 = vld [vmem:[%s796_s7 + $0x80] sm:$0xff] (%p33_p3) }
  0x18   : > { %215 = vst [vmem:[%s186_s8 + $0x30] sm:$0xff] %v214_v7  ;;  %217 = vst [vmem:[%s186_s8 + $0x38] sm:$0xff] %v216_v8  ;;  %v220_v10 = vld [vmem:[%s796_s7 + $0x88] sm:$0xff]  ;;  %v222_v11 = vld [vmem:[%s796_s7 + $0x90] sm:$0xff] }
  0x19   : > { %219 = vst [vmem:[%s186_s8 + $0x40] sm:$0xff] %v218_v9  ;;  %v224_v12 = vld [vmem:[%s796_s7 + $0x98] sm:$0xff]  ;;  %221 = vst [vmem:[%s186_s8 + $0x48] sm:$0xff] %v220_v10  ;;  %v226_v13 = vld [vmem:[%s796_s7 + $0xc0] sm:$0xff] }
  0x1a   : > { %223 = vst [vmem:[%s186_s8 + $0x50] sm:$0xff] %v222_v11  ;;  %225 = vst [vmem:[%s186_s8 + $0x58] sm:$0xff] %v224_v12  ;;  %v228_v14 = vld [vmem:[%s796_s7 + $0xc8] sm:$0xff]  ;;  %v230_v15 = vld [vmem:[%s796_s7 + $0xd0] sm:$0xff] }
  0x1b   : > { %227 = vst [vmem:[%s186_s8 + $0x60] sm:$0xff] %v226_v13  ;;  %229 = vst [vmem:[%s186_s8 + $0x68] sm:$0xff] %v228_v14  ;;  %v232_v16 = vld [vmem:[%s796_s7 + $0xd8] sm:$0xff] }
  0x1c   : > { %231 = vst [vmem:[%s186_s8 + $0x70] sm:$0xff] %v230_v15  ;;  %233 = vst [vmem:[%s186_s8 + $0x78] sm:$0xff] %v232_v16 }
  0x1d PF: > { %p630_p5 = scmp.ge.s32.totalorder %s724_s22, 1  ;;  %p238_p6 = scmp.lt.s32.totalorder %s724_s22, 3 }
  0x1f   : > { %p239_p7 = pnand %p630_p5, %p238_p6 }
  0x20   : > { %s245_s9 = sand.u32 (!%p239_p7), 1, %s716_s20   ;;  %vm306_vm0 = vcmask (!%p239_p7), 1042432   ;;  %v726_v17 = vmov (!%p239_p7), 0.0   ;;  %v296_v18 = vld [vmem:[%s864_s2] sm:$0x1f] (!%p239_p7)  ;;  %vm727_vm1 = vmmov (!%p239_p7), 1  }
  0x21   : > { %242 = sbr.rel (%p239_p7) target bundleno = 644 (0x284), region = 59  ;;  %s631_s10 = sshll.u32 (!%p239_p7), %s245_s9, 7  ;;  %383 = vmatprep.mubr.f32.mxu0 (!%p239_p7), %v726_v17  ;;  %454 = vmatprep.mubr.f32.mxu1 (!%p239_p7), %v726_v17  ;;  %vm820_vm2 = vmpackc.low (!%p239_p7), %vm306_vm0, %vm727_vm1  ;;  %v728_v20 = vmov (!%p239_p7), 0   ;;  %v279_v45 = vld [vmem:[%s863_s1] sm:$0x1f] (!%p239_p7)  ;;  %vm302_vm3 = vcmask (!%p239_p7), 220160  }
  0x22   : > { %692 = vset.pattern.permute.xlu0 (!%p239_p7), %v728_v20  ;;  %693 = vset.pattern.permute.xlu1 (!%p239_p7), %v728_v20  ;;  %s247_s13 = scalar_lea.vmem (!%p239_p7), [#allocation3], %s631_s10  ;;  %vm505_vm4 = vcmask (!%p239_p7), 1044480   ;;  %s632_s29 = sshll.u32 (!%p239_p7), %s623_s4, 2 }
  0x23   : > { %v281_v21 = vld [vmem:[%s247_s13 + $0x8] sm:$0xff] (!%p239_p7)  ;;  %v283_v23 = vld [vmem:[%s247_s13 + $0x18] sm:$0xff] (!%p239_p7)  ;;  %299 = vperm.xlu0 (!%p239_p7), %692, %v296_v18   ;;  %v280_v26 = vld [vmem:[%s247_s13] sm:$0xff] (!%p239_p7)  ;;  %p274_p8 = scmp.lt.s32.totalorder (!%p239_p7), %s632_s29, 7 }
  0x24   : > { %v285_v22 = vld [vmem:[%s247_s13 + $0x28] sm:$0xff] (!%p239_p7)  ;;  %v287_v25 = vld [vmem:[%s247_s13 + $0x38] sm:$0xff] (!%p239_p7)  ;;  %v284_v27 = vld [vmem:[%s247_s13 + $0x20] sm:$0xff] (!%p239_p7) }
  0x25   : > { %v643_v24 = vpack.c.bf16 (!%p239_p7), %v285_v22, %v281_v21  ;;  %v653_v28 = vpack.c.bf16 (!%p239_p7), %v287_v25, %v283_v23  ;;  %v645_v29 = vpack.c.bf16 (!%p239_p7), %v284_v27, %v280_v26  ;;  %v282_v30 = vld [vmem:[%s247_s13 + $0x10] sm:$0xff] (!%p239_p7)  ;;  %v289_v32 = vld [vmem:[%s247_s13 + $0x48] sm:$0xff] (!%p239_p7)  ;;  %v291_v35 = vld [vmem:[%s247_s13 + $0x58] sm:$0xff] (!%p239_p7) }
  0x26   : > { %v286_v31 = vld [vmem:[%s247_s13 + $0x30] sm:$0xff] (!%p239_p7)  ;;  %v293_v34 = vld [vmem:[%s247_s13 + $0x68] sm:$0x7] (!%p239_p7)  ;;  %v295_v36 = vld [vmem:[%s247_s13 + $0x78] sm:$0x7] (!%p239_p7) }
  0x27   : > { %644 = vmatprep.subr.bf16.mxu0 (!%p239_p7), %v643_v24  ;;  %v655_v33 = vpack.c.bf16 (!%p239_p7), %v286_v31, %v282_v30  ;;  %654 = vmatprep.subr.bf16.mxu1 (!%p239_p7), %v653_v28  ;;  %v647_v37 = vpack.c.bf16 (!%p239_p7), %v293_v34, %v289_v32  ;;  %v657_v38 = vpack.c.bf16 (!%p239_p7), %v295_v36, %v291_v35  ;;  %v288_v39 = vld [vmem:[%s247_s13 + $0x40] sm:$0xff] (!%p239_p7)  ;;  %v290_v41 = vld [vmem:[%s247_s13 + $0x50] sm:$0xff] (!%p239_p7) }
  0x28   : > { %646 = vmatpush1.bf16.msra.mxu0 %v645_v29  ;;  %v292_v40 = vld [vmem:[%s247_s13 + $0x60] sm:$0x7]  ;;  %v294_v43 = vld [vmem:[%s247_s13 + $0x70] sm:$0x7]  ;;  %v498_v23 = vld [vmem:[%s865_s3 + $0x8] sm:$0x1f] }
  0x29   : > { %656 = vmatpush1.bf16.msra.mxu1 %v655_v33  ;;  %v650_v42 = vpack.c.bf16 %v292_v40, %v288_v39  ;;  %649 = vmatprep.subr.msk.bf16.mxu0 %vm820_vm2, %v647_v37  ;;  %v660_v44 = vpack.c.bf16 %v294_v43, %v290_v41  ;;  %v497_v18 = vld [vmem:[%s865_s3] sm:$0x1f]  ;;  %v499_v27 = vld [vmem:[%s865_s3 + $0x10] sm:$0x1f]  ;;  %v500_v31 = vld [vmem:[%s865_s3 + $0x18] sm:$0x1f] }
  0x2a   : > { %659 = vmatprep.subr.msk.bf16.mxu1 %vm820_vm2, %v657_v38  ;;  %s874_s29 = smov (!%p274_p8, %s632_s29), 7 }
  0x2b   : > { %s633_s30 = sshll.u32 %s874_s29, 3 }
  0x2c   : > { %652 = vmatpush1.bf16.msk.msra.mxu0 %vm820_vm2, %v650_v42  ;;  %s277_s8 = scalar_lea.vmem %s867_s5, %s633_s30 }
  0x2d   : > { %662 = vmatpush1.bf16.msk.msra.mxu1 %vm820_vm2, %v660_v44 }
  0x2f   : > { %636 = vmatmul.mubr.msk.f32.vlgmr.msra.gmra.mrb[0].mxu0 %vm302_vm3, %v279_v45 }
  0x30   : > { %639 = vmatmul.mubr.msk.f32.vlgmr.msra.gmra.mrb[0].mxu1 %vm302_vm3, %v279_v45 }
  0xa2   : > { %v300_v46 = vpop.permute.xlu0 %299 }
 0x102   : > { %v385_v47 = vpop.f32.mrb[0].mxu0 }
 0x103   : > { %v386_v48 = vadd.f32 %v385_v47, %v300_v46  ;;  %v456_v49 = vpop.f32.mrb[0].mxu1  ;;  %v387_v50 = vpop.f32.mrb[1].mxu0 }
 0x104   : > { %v457_v51 = vadd.f32 %v456_v49, %v300_v46  ;;  %v388_v52 = vadd.f32 %v387_v50, %v300_v46  ;;  %v458_v53 = vpop.f32.mrb[1].mxu1  ;;  %v532_v49 = vlaneseq }
 0x105   : > { %v465_v54 = vmul.f32 %v386_v48, %v386_v48  ;;  %v459_v55 = vadd.f32 %v458_v53, %v300_v46  ;;  %v461_v13 = vmul.f32 0.5, %v386_v48 }
 0x106   : > { %v467_v56 = vmul.f32 %v457_v51, %v457_v51  ;;  %v466_v57 = vmul.f32 %v388_v52, %v388_v52  ;;  %v463_v16 = vmul.f32 0.5, %v457_v51  ;;  %v462_v20 = vmul.f32 0.5, %v388_v52 }
 0x107   : > { %v469_v58 = vmul.f32 %v465_v54, %v386_v48  ;;  %v468_v59 = vmul.f32 %v459_v55, %v459_v55  ;;  %v464_v24 = vmul.f32 0.5, %v459_v55  ;;  %v533_v50 = vshrl.u32 %v532_v49, 7 }
 0x108   : > { %v471_v60 = vmul.f32 %v467_v56, %v457_v51  ;;  %v470_v61 = vmul.f32 %v466_v57, %v388_v52 }
 0x109   : > { %v473_v62 = vmul.f32 0.044715, %v469_v58  ;;  %v472_v63 = vmul.f32 %v468_v59, %v459_v55  ;;  %v534_v54 = vsub.s32 0, %v533_v50 }
 0x10a   : > { %v475_v0 = vmul.f32 0.044715, %v471_v60  ;;  %v474_v1 = vmul.f32 0.044715, %v470_v61 }
 0x10b   : > { %v477_v2 = vadd.f32 %v473_v62, %v386_v48  ;;  %v476_v3 = vmul.f32 0.044715, %v472_v63 }
 0x10c   : > { %v479_v4 = vadd.f32 %v475_v0, %v457_v51  ;;  %v478_v5 = vadd.f32 %v474_v1, %v388_v52  ;;  %v523_v51 = vld [vmem:[#allocation2] sm:$0x1] }
 0x10d   : > { %v481_v6 = vmul.f32 0.7978846, %v477_v2  ;;  %v480_v7 = vadd.f32 %v476_v3, %v459_v55 }
 0x10e   : > { %v483_v8 = vmul.f32 0.7978846, %v479_v4  ;;  %v482_v9 = vmul.f32 0.7978846, %v478_v5 }
 0x10f   : > { %694 = vtanh.f32 %v481_v6  ;;  %v484_v10 = vmul.f32 0.7978846, %v480_v7 }
 0x110   : > { %696 = vtanh.f32 %v483_v8 }
 0x111   : > { %698 = vtanh.f32 %v482_v9 }
 0x112   : > { %700 = vtanh.f32 %v484_v10 }
 0x119   : > { %v695_v11 = vpop.eup %694 }
 0x11a   : > { %v697_v12 = vpop.eup %696  ;;  %v489_v14 = vadd.f32 1.0, %v695_v11 }
 0x11b   : > { %v699_v15 = vpop.eup %698  ;;  %v491_v17 = vadd.f32 1.0, %v697_v12 }
 0x11c   : > { %v701_v19 = vpop.eup %700  ;;  %v490_v21 = vadd.f32 1.0, %v699_v15  ;;  %v493_v22 = vmul.f32 %v489_v14, %v461_v13 }
 0x11d   : > { %v492_v25 = vadd.f32 1.0, %v701_v19  ;;  %v495_v26 = vmul.f32 %v491_v17, %v463_v16 }
 0x11e   : > { %v494_v28 = vmul.f32 %v490_v21, %v462_v20  ;;  %v501_v29 = vmul.f32 %v497_v18, %v493_v22  ;;  %v527_v60 = vmul.f32 0.01, %v493_v22 }
 0x11f   : > { %v496_v30 = vmul.f32 %v492_v25, %v464_v24  ;;  %v503_v33 = vmul.f32 %v499_v27, %v495_v26  ;;  %v529_v62 = vmul.f32 0.01, %v495_v26 }
 0x120   : > { %v502_v32 = vmul.f32 %v498_v23, %v494_v28  ;;  %v506_v34 = vsel %vm505_vm4, %v501_v29, 0.0  ;;  %v528_v61 = vmul.f32 0.01, %v494_v28 }
 0x121   : > { %v504_v35 = vmul.f32 %v500_v31, %v496_v30  ;;  %v509_v38 = vsel %vm505_vm4, %v503_v33, 0.0  ;;  %v530_v1 = vmul.f32 0.01, %v496_v30 }
 0x122   : > { %v507_v36 = vsel %vm505_vm4, %v502_v32, 0.0 }
 0x123   : > { %v508_v37 = vadd.f32 %v507_v36, %v506_v34  ;;  %v511_v40 = vsel %vm505_vm4, %v504_v35, 0.0 }
 0x125   : > { %v510_v39 = vadd.f32 %v509_v38, %v508_v37 }
 0x127   : > { %v512_v41 = vadd.f32 %v511_v40, %v510_v39 }
 0x129   : > { %513 = vadd.xlane.f32.xlu0 %v512_v41 }
 0x1b6   : > { %v514_v42 = vpop.xlane.xlu0 %513 }
 0x1b7   : > { %v515_v43 = vrot.slane %v514_v42, 4 }
 0x1b9   : > { %v516_v44 = vadd.f32 %v515_v43, %v514_v42 }
 0x1bb   : > { %v517_v45 = vrot.slane %v516_v44, 2 }
 0x1bd   : > { %v518_v46 = vadd.f32 %v517_v45, %v516_v44 }
 0x1bf   : > { %v519_v47 = vrot.slane %v518_v46, 1 }
 0x1c1   : > { %v520_v48 = vadd.f32 %v519_v47, %v518_v46 }
 0x1c3   : > { %663 = vpush %v520_v48 }
 0x1f4   : > { %s664_s28 = spop %663 }
 0x1f5   : > { %v522_v52 = vstv %s664_s28 }
 0x1f6   : > { %v524_v53 = vadd.f32 %v523_v51, %v522_v52 }
 0x1f8   : > { %v525_v55 = vmul.f32 0.1, %v524_v53 }
 0x1fa   : > { %v526_v56 = vadd.f32 %v525_v55, %v524_v53  ;;  %v535_v57 = vrot.slane %v525_v55, %v534_v54 }
 0x1fc   : > { %537 = vperm.xlu1 %693, %v535_v57   ;;  %v548_v58 = vrot.slane %v526_v56, %v534_v54 }
 0x200   : > { %550 = vperm.xlu1 %693, %v548_v58  }
 0x27b   : > { %v538_v59 = vpop.permute.xlu1 %537 }
 0x27c   : > { %v540_v63 = vadd.f32 %v538_v59, %v527_v60  ;;  %v541_v0 = vadd.f32 %v538_v59, %v528_v61  ;;  %v542_v3 = vadd.f32 %v538_v59, %v529_v62  ;;  %v543_v6 = vadd.f32 %v538_v59, %v530_v1 }
 0x27f   : > { %v551_v2 = vpop.permute.xlu1 %550 }
 0x280   : > { %v553_v4 = vmul.f32 %v551_v2, %v540_v63  ;;  %v554_v5 = vmul.f32 %v551_v2, %v541_v0  ;;  %v555_v7 = vmul.f32 %v551_v2, %v542_v3  ;;  %v556_v8 = vmul.f32 %v551_v2, %v543_v6 }
 0x282   : > { %557 = vst [vmem:[%s277_s8] sm:$0x1f] %v553_v4  ;;  %558 = vst [vmem:[%s277_s8 + $0x8] sm:$0x1f] %v554_v5 }
 0x283   : > { %559 = vst [vmem:[%s277_s8 + $0x10] sm:$0x1f] %v555_v7  ;;  %560 = vst [vmem:[%s277_s8 + $0x18] sm:$0x1f] %v556_v8 }
 0x284 PF: > { %p14_p9 = scmp.ge.s32.totalorder %s779_s23, 4   ;;  %s870_s20 = smov %s720_s21 }
 0x285   : > { %s871_s21 = smov %s788_s26  ;;  %s872_s22 = smov %s779_s23 }
 0x286   :  { %16 = sbr.rel (!%p14_p9) target bundleno = 5 (0x5), region = 98 }

</bundles_post_ra>
